<compile_context>
chip_gen: v7x
topology: tpu7x:2x2x1
jax: 0.10.0
libtpu: 0.0.40
codegen_flags: <defaults>
</compile_context>

<pallas_src>
import jax
import jax.numpy as jnp
from jax.experimental import pallas as pl
from jax.experimental.pallas import tpu as pltpu

IN_FEATURES = 3    # model input width
OUT_FEATURES = 3   # model output width (after layer3)


def _affine_kernel(x_ref, wb_ref, o_ref):
    """y = x @ W_eff + b_eff, computed as an unrolled VPU FMA chain (no MXU).

    x_ref  : (TB, IN_FEATURES)        batch tile
    wb_ref : (IN_FEATURES + 1, OUT)   rows 0..IN-1 = W_eff (in,out), row IN = b_eff
    o_ref  : (TB, OUT_FEATURES)
    """
    x = x_ref[...].astype(jnp.float32)
    # Start from the bias (sublane-broadcast), then 3 broadcast-multiply-adds.
    acc = jnp.broadcast_to(
        wb_ref[IN_FEATURES:IN_FEATURES + 1, :], (x.shape[0], OUT_FEATURES)
    ).astype(jnp.float32)
    for k in range(IN_FEATURES):  # statically unrolled: 3-term FMA chain on the VPU
        acc = acc + x[:, k:k + 1] * wb_ref[k:k + 1, :]
    o_ref[...] = acc.astype(o_ref.dtype)


def fold_params(params):
    """Collapse the purely-affine 5-layer chain into a packed (IN+1, OUT) slab.

    params: list of (W, b) with W of shape (out, in) — PyTorch convention.
    Done ONCE at parameter-prep time (not per forward call).
    """
    W_eff = jnp.eye(IN_FEATURES, dtype=jnp.float32)
    b_eff = jnp.zeros((IN_FEATURES,), dtype=jnp.float32)
    for (W, b) in params:
        Wt = W.T.astype(jnp.float32)          # (in, out) so y = x @ Wt + b
        W_eff = W_eff @ Wt
        b_eff = b_eff @ Wt + b.astype(jnp.float32)
    # Pack weights + bias into a single operand => one DMA, one BlockSpec.
    return jnp.concatenate([W_eff, b_eff[None, :]], axis=0)  # (IN+1, OUT)


def mlp_chain(x, wb_packed, *, block_batch=1024):
    """Forward pass of MyModel using the pre-folded packed parameters."""
    batch = x.shape[0]
    tb = min(batch, block_batch)
    grid = (pl.cdiv(batch, tb),)
    return pl.pallas_call(
        _affine_kernel,
        out_shape=jax.ShapeDtypeStruct((batch, OUT_FEATURES), x.dtype),
        grid=grid,
        in_specs=[
            pl.BlockSpec((tb, IN_FEATURES), lambda i: (i, 0)),
            pl.BlockSpec((IN_FEATURES + 1, OUT_FEATURES), lambda i: (0, 0)),
        ],
        out_specs=pl.BlockSpec((tb, OUT_FEATURES), lambda i: (i, 0)),
        compiler_params=pltpu.CompilerParams(
            dimension_semantics=("parallel",)),  # shard batch tiles across TCs (v7x)
    )(x, wb_packed)


def init_linear(key, out_features, in_features):
    """Deterministic init mimicking PyTorch nn.Linear default (uniform +-1/sqrt(in))."""
    kw, kb = jax.random.split(key)
    bound = 1.0 / jnp.sqrt(jnp.float32(in_features))
    W = jax.random.uniform(kw, (out_features, in_features), jnp.float32, -bound, bound)
    b = jax.random.uniform(kb, (out_features,), jnp.float32, -bound, bound)
    return W, b


def reference_forward(x, params):
    """Unfolded reference matching the PyTorch module layer-by-layer."""
    h = x
    for (W, b) in params:
        h = h @ W.T + b
    return h


if __name__ == "__main__":
    key = jax.random.PRNGKey(0)
    keys = jax.random.split(key, 6)

    # Layer sizes from the module: 3->4, 4->3, 3->6, 6->7, 7->3  (W is (out, in))
    dims = [(4, 3), (3, 4), (6, 3), (7, 6), (3, 7)]
    params = [init_linear(k, o, i) for k, (o, i) in zip(keys[:5], dims)]

    batch = 8
    x = jax.random.normal(keys[5], (batch, IN_FEATURES), jnp.float32)

    # Fold/pack parameters once (hoisted out of the per-call path).
    wb_packed = jax.block_until_ready(fold_params(params))

    out = mlp_chain(x, wb_packed)
    out = jax.block_until_ready(out)

    ref = reference_forward(x, params)
    assert out.shape == (batch, OUT_FEATURES)
    assert jnp.allclose(out, ref, atol=1e-5, rtol=1e-5), "mismatch vs reference"

    print("KERNEL_OK")
</pallas_src>

<mosaic_0001>
module attributes {stable_mosaic.version = 11 : i64} {
  func.func @_affine_kernel(%arg0: i32, %arg1: memref<8x3xf32, #tpu.memory_space<vmem>>, %arg2: memref<4x3xf32, #tpu.memory_space<vmem>>, %arg3: memref<8x3xf32, #tpu.memory_space<vmem>>) attributes {dimension_semantics = [#tpu.dimension_semantics<parallel>], iteration_bounds = array<i64: 1>, scalar_prefetch = 0 : i64, scratch_operands = 0 : i64, tpu.core_type = #tpu.core_type<tc>, window_params = [{transform_indices = @transform_0, window_bounds = array<i64: 8, 3>}, {pipeline_mode = #tpu.pipeline_mode<synchronous>, transform_indices = @transform_1, window_bounds = array<i64: 4, 3>}, {transform_indices = @transform_2, window_bounds = array<i64: 8, 3>}]} {
    %c0 = arith.constant 0 : index
    %c0_0 = arith.constant 0 : index
    %0 = vector.load %arg1[%c0, %c0_0] : memref<8x3xf32, #tpu.memory_space<vmem>>, vector<8x3xf32>
    %c3 = arith.constant 3 : index
    %c0_1 = arith.constant 0 : index
    %1 = vector.load %arg2[%c3, %c0_1] : memref<4x3xf32, #tpu.memory_space<vmem>>, vector<1x3xf32>
    %2 = vector.shape_cast %1 : vector<1x3xf32> to vector<1x3xf32>
    %3 = vector.broadcast %2 : vector<1x3xf32> to vector<8x3xf32>
    %4 = vector.extract_strided_slice %0 {offsets = [0, 0], sizes = [8, 1], strides = [1, 1]} : vector<8x3xf32> to vector<8x1xf32>
    %c0_2 = arith.constant 0 : index
    %c0_3 = arith.constant 0 : index
    %5 = vector.load %arg2[%c0_2, %c0_3] : memref<4x3xf32, #tpu.memory_space<vmem>>, vector<1x3xf32>
    %6 = vector.broadcast %4 : vector<8x1xf32> to vector<8x3xf32>
    %7 = vector.broadcast %5 : vector<1x3xf32> to vector<8x3xf32>
    %8 = arith.mulf %6, %7 : vector<8x3xf32>
    %9 = arith.addf %3, %8 : vector<8x3xf32>
    %10 = vector.extract_strided_slice %0 {offsets = [0, 1], sizes = [8, 1], strides = [1, 1]} : vector<8x3xf32> to vector<8x1xf32>
    %c1 = arith.constant 1 : index
    %c0_4 = arith.constant 0 : index
    %11 = vector.load %arg2[%c1, %c0_4] : memref<4x3xf32, #tpu.memory_space<vmem>>, vector<1x3xf32>
    %12 = vector.broadcast %10 : vector<8x1xf32> to vector<8x3xf32>
    %13 = vector.broadcast %11 : vector<1x3xf32> to vector<8x3xf32>
    %14 = arith.mulf %12, %13 : vector<8x3xf32>
    %15 = arith.addf %9, %14 : vector<8x3xf32>
    %16 = vector.extract_strided_slice %0 {offsets = [0, 2], sizes = [8, 1], strides = [1, 1]} : vector<8x3xf32> to vector<8x1xf32>
    %c2 = arith.constant 2 : index
    %c0_5 = arith.constant 0 : index
    %17 = vector.load %arg2[%c2, %c0_5] : memref<4x3xf32, #tpu.memory_space<vmem>>, vector<1x3xf32>
    %18 = vector.broadcast %16 : vector<8x1xf32> to vector<8x3xf32>
    %19 = vector.broadcast %17 : vector<1x3xf32> to vector<8x3xf32>
    %20 = arith.mulf %18, %19 : vector<8x3xf32>
    %21 = arith.addf %15, %20 : vector<8x3xf32>
    %c0_6 = arith.constant 0 : index
    %c0_7 = arith.constant 0 : index
    %22 = vector.load %arg3[%c0_6, %c0_7] : memref<8x3xf32, #tpu.memory_space<vmem>>, vector<8x3xf32>
    tpu.vector_store %arg3[%c0_6, %c0_7], %21 {strides = array<i32>} : memref<8x3xf32, #tpu.memory_space<vmem>>, vector<8x3xf32>,
    return
  }
  func.func @transform_0(%arg0: i32) -> (i32, i32) {
    %c0_i32 = arith.constant 0 : i32
    %c0_i32_0 = arith.constant 0 : i32
    return %arg0, %c0_i32 : i32, i32
  }
  func.func @transform_1(%arg0: i32) -> (i32, i32) {
    %c0_i32 = arith.constant 0 : i32
    %c0_i32_0 = arith.constant 0 : i32
    %c0_i32_1 = arith.constant 0 : i32
    return %c0_i32, %c0_i32_0 : i32, i32
  }
  func.func @transform_2(%arg0: i32) -> (i32, i32) {
    %c0_i32 = arith.constant 0 : i32
    %c0_i32_0 = arith.constant 0 : i32
    return %arg0, %c0_i32 : i32, i32
  }
}

</mosaic_0001>

<bundles_post_ra>
// kernel: tpu_custom_call.1
= control target key start
LH: loop header
LB: loop body
LE: loop exit
PB: predicated region body
PF: predicated region fallthrough
CT: control target
= control target key end

     0   :  { %v68_v0 = vmov 0   ;;  %v69_v2 = vmov 2   ;;  %v70_v3 = vmov 1   ;;  %vm51_vm0 = vcmask 23552   ;;  %s104_s0 = inlined_call_operand.vmem [shape: f32[8,3], index: 0, kind: input, shape index: {}]   ;;  %s105_s1 = inlined_call_operand.vmem [shape: f32[4,3], index: 1, kind: input, shape index: {}]   ;;  %s106_s2 = inlined_call_operand.vmem [shape: f32[8,3], index: 2, kind: output, shape index: {}]  }
   0x1   :  { %64 = vset.pattern.permute.xlu0 %v68_v0  ;;  %v11_v1 = vld [vmem:[%s104_s0] sm:$0xff]  ;;  %66 = vset.pattern.permute.xlu1 %v69_v2 }
   0x2   :  { %20 = vperm.xlu0 %64, %v11_v1   ;;  %42 = vperm.xlu1 %66, %v11_v1   ;;  %v58_v4 = vld [vmem:[%s105_s1] ss:$0 sm:$0xff]  ;;  %v57_v7 = vld [vmem:[%s105_s1 + $0x3] ss:$0 sm:$0xff]  ;;  %v59_v8 = vld [vmem:[%s105_s1 + $0x1] ss:$0 sm:$0xff] }
   0x3   :  { %v60_v9 = vld [vmem:[%s105_s1 + $0x2] ss:$0 sm:$0xff] }
   0x6   :  { %65 = vset.pattern.permute.xlu0 %v70_v3 }
   0x7   :  { %31 = vperm.xlu0 %65, %v11_v1  }
   0xb   :  { %67 = vset.pattern.permute.xlu0 %v69_v2 }
  0x81   :  { %v21_v5 = vpop.permute.xlu0 %20  ;;  %v43_v10 = vpop.permute.xlu1 %42 }
  0x82   :  { %v27_v6 = vmul.f32 %v58_v4, %v21_v5  ;;  %v49_v14 = vmul.f32 %v60_v9, %v43_v10 }
  0x84   :  { %v28_v12 = vadd.f32 %v57_v7, %v27_v6 }
  0x86   :  { %v32_v11 = vpop.permute.xlu0 %31 }
  0x87   :  { %v38_v13 = vmul.f32 %v59_v8, %v32_v11 }
  0x89   :  { %v39_v15 = vadd.f32 %v38_v13, %v28_v12 }
  0x8b   :  { %v50_v16 = vadd.f32 %v49_v14, %v39_v15 }
  0x8d   :  { %52 = vst.msk [vmem:[%s106_s2] sm:$0xff] %vm51_vm0, %v50_v16 }

</bundles_post_ra>
